<compile_context>
chip_gen: v7x
topology: tpu7x:2x2x1
jax: 0.10.0
libtpu: 0.0.40
codegen_flags: <defaults>
</compile_context>

<pallas_src>
import jax
import jax.numpy as jnp
from jax.experimental import pallas as pl
from jax.experimental.pallas import tpu as pltpu


def _round_up(x: int, m: int) -> int:
    return ((x + m - 1) // m) * m


# ---------------------------------------------------------------------------
# Logits kernel:  o[:, j*TN:(j+1)*TN] = h @ WT[:, j*TN:(j+1)*TN]
#   * h (batch_p, emb) uses the same block every grid step -> DMA'd to VMEM
#     once and stays resident across the whole grid.
#   * WT streams one lane-dense (emb, TN) column block per step, double-
#     buffered by the BlockSpec pipeline.
#   * f32 accumulation on the MXU regardless of the storage dtype.
# ---------------------------------------------------------------------------
def _logits_kernel(h_ref, wt_ref, o_ref):
    o_ref[...] = jnp.dot(
        h_ref[...], wt_ref[...], preferred_element_type=jnp.float32
    ).astype(o_ref.dtype)


def _pick_tile_n(voc_p, emb, batch_p, wt_itemsize, target_tn, vmem_budget):
    """Largest lane-dense vocab tile that (a) fits a conservative VMEM budget
    (v5e's 16 MiB scoped default is the binding one across generations) and
    (b) leaves >= 2 grid steps whenever voc allows, so both v7x TensorCores
    get work under dimension_semantics=("parallel",)."""
    tn = _round_up(min(target_tn, voc_p), 128)
    if voc_p >= 256:
        tn = min(tn, _round_up(voc_p // 2, 128))

    # double-buffered WT block + double-buffered f32 output block + resident h
    def vmem_bytes(t):
        return 2 * t * (emb * wt_itemsize + batch_p * 4) + batch_p * emb * wt_itemsize

    while tn > 128 and vmem_bytes(tn) > vmem_budget:
        tn -= 128
    return max(tn, 128)


def _logits(h, wt_p, *, target_tn=2048, vmem_budget=12 << 20):
    """o = h @ wt_p, tiled over the (128-padded) vocab axis."""
    batch_p, emb = h.shape
    emb2, voc_p = wt_p.shape
    assert emb == emb2 and voc_p % 128 == 0

    tn = _pick_tile_n(voc_p, emb, batch_p, wt_p.dtype.itemsize, target_tn, vmem_budget)
    grid_n = pl.cdiv(voc_p, tn)

    cost = pl.CostEstimate(
        flops=2 * batch_p * emb * voc_p,
        transcendentals=0,
        bytes_accessed=(
            emb * voc_p * wt_p.dtype.itemsize     # dominant WT stream
            + batch_p * voc_p * 4                 # f32 logits writeback
            + batch_p * emb * h.dtype.itemsize    # resident h (once)
        ),
    )

    return pl.pallas_call(
        _logits_kernel,
        out_shape=jax.ShapeDtypeStruct((batch_p, voc_p), jnp.float32),
        grid=(grid_n,),
        in_specs=[
            # h is tiny; same block index every step -> loaded once, resident.
            pl.BlockSpec((batch_p, emb), lambda j: (0, 0)),
            # WT streams through VMEM one lane-dense column block per step.
            pl.BlockSpec((emb, tn), lambda j: (0, j)),
        ],
        out_specs=pl.BlockSpec((batch_p, tn), lambda j: (0, j)),
        compiler_params=pltpu.CompilerParams(
            # Independent vocab-column blocks: v7x's 2 TensorCores split them.
            dimension_semantics=("parallel",),
        ),
        cost_estimate=cost,
    )(h, wt_p)


# ---------------------------------------------------------------------------
# Parameter prep (do ONCE at init, never per forward call)
# ---------------------------------------------------------------------------
def prepare_params(w, wt, *, compute_dtype=jnp.bfloat16):
    """Cast W/WT to the compute dtype (bf16 halves the dominant WT HBM stream
    on every generation; on v7x `jnp.float8_e4m3fn` is also an option) and
    zero-pad WT's vocab axis to a multiple of 128 lanes.
    Returns (w_c, wt_p, voc)."""
    voc, emb = w.shape
    assert wt.shape == (emb, voc)
    voc_p = _round_up(voc, 128)
    w_c = w.astype(compute_dtype)
    wt_p = wt.astype(compute_dtype)
    if voc_p != voc:
        wt_p = jnp.pad(wt_p, ((0, 0), (0, voc_p - voc)))
    return w_c, wt_p, voc


def _pad_batch(h, batch):
    # Pad rows to a multiple of 8 sublanes.  NOTE: for throughput, callers
    # should stack center-word batches to 128-256 rows per call; with batch=8
    # only a few MXU rows are used and the kernel is purely WT-bandwidth bound.
    batch_p = max(8, _round_up(batch, 8))
    if batch_p != batch:
        h = jnp.pad(h, ((0, batch_p - batch), (0, 0)))
    return h


def word2vec_forward(idx, w_c, wt_p, voc, *, target_tn=2048):
    """Logits for center-word indices `idx` (== one_hot(idx) @ W @ WT)."""
    batch = idx.shape[0]
    idx = jnp.clip(idx.astype(jnp.int32), 0, voc - 1)   # bounds clamp
    h = w_c[idx]                                        # tiny XLA row gather
    out = _logits(_pad_batch(h, batch), wt_p, target_tn=target_tn)
    return out[:batch, :voc]


def word2vec_forward_onehot(x, w_c, wt_p, voc, *, target_tn=2048):
    """Same call semantics as the PyTorch forward(X): h = X @ W ; o = h @ WT.
    Exact for arbitrary X (not just one-hot); the dominant h @ WT runs in the
    Pallas kernel."""
    batch = x.shape[0]
    h = jnp.dot(x.astype(jnp.float32), w_c.astype(jnp.float32)).astype(w_c.dtype)
    out = _logits(_pad_batch(h, batch), wt_p, target_tn=target_tn)
    return out[:batch, :voc]


if __name__ == "__main__":
    # Small but non-trivial shapes: vocab not a multiple of 128 (exercises the
    # 128-padding path) and a multi-step grid (exercises pipeline + megacore).
    voc_size = 1000
    embedding_size = 2           # matches the original script
    batch = 8

    key = jax.random.PRNGKey(0)
    k_w, k_wt, k_idx = jax.random.split(key, 3)

    # nn.Parameter(-2 * torch.rand(...) + 1)  ->  uniform in (-1, 1]
    W = -2.0 * jax.random.uniform(k_w, (voc_size, embedding_size), jnp.float32) + 1.0
    WT = -2.0 * jax.random.uniform(k_wt, (embedding_size, voc_size), jnp.float32) + 1.0

    # One-time parameter prep (bf16 storage + 128-lane padding of WT).
    w_c, wt_p, voc = prepare_params(W, WT, compute_dtype=jnp.bfloat16)

    # Skip-gram center-word batch (the original feeds one-hot rows of these).
    idx = jax.random.randint(k_idx, (batch,), 0, voc_size, dtype=jnp.int32)
    X = jax.nn.one_hot(idx, voc_size, dtype=jnp.float32)

    fwd = jax.jit(lambda i: word2vec_forward(i, w_c, wt_p, voc))
    fwd_onehot = jax.jit(lambda x: word2vec_forward_onehot(x, w_c, wt_p, voc))

    out = jax.block_until_ready(fwd(idx))
    out2 = jax.block_until_ready(fwd_onehot(X))

    # Reference: the literal PyTorch forward, h = X @ W ; o = h @ WT (f32).
    ref = (X @ W) @ WT
    assert out.shape == (batch, voc_size)
    assert jnp.allclose(out, ref, atol=2e-2, rtol=2e-2)
    assert jnp.allclose(out2, ref, atol=2e-2, rtol=2e-2)

    print("KERNEL_OK")
</pallas_src>

<mosaic_0001>
module attributes {stable_mosaic.version = 11 : i64} {
  func.func @_logits_kernel(%arg0: i32, %arg1: memref<8x2xbf16, #tpu.memory_space<vmem>>, %arg2: memref<2x512xbf16, #tpu.memory_space<vmem>>, %arg3: memref<8x512xf32, #tpu.memory_space<vmem>>) attributes {dimension_semantics = [#tpu.dimension_semantics<parallel>], iteration_bounds = array<i64: 2>, scalar_prefetch = 0 : i64, scratch_operands = 0 : i64, tpu.core_type = #tpu.core_type<tc>, window_params = [{pipeline_mode = #tpu.pipeline_mode<synchronous>, transform_indices = @transform_0, window_bounds = array<i64: 8, 2>}, {transform_indices = @transform_1, window_bounds = array<i64: 2, 512>}, {transform_indices = @transform_2, window_bounds = array<i64: 8, 512>}]} {
    %c0 = arith.constant 0 : index
    %c0_0 = arith.constant 0 : index
    %0 = vector.load %arg1[%c0, %c0_0] : memref<8x2xbf16, #tpu.memory_space<vmem>>, vector<8x2xbf16>
    %c0_1 = arith.constant 0 : index
    %c0_2 = arith.constant 0 : index
    %1 = vector.load %arg2[%c0_1, %c0_2] : memref<2x512xbf16, #tpu.memory_space<vmem>>, vector<2x512xbf16>
    %cst = arith.constant dense<0.000000e+00> : vector<8x512xf32>
    %2 = tpu.matmul %0, %1, %cst {dimension_numbers = #tpu.dot_dimension_numbers<[1], [0], [0], [1], [0, 0, 1, 1], [], []>} : vector<8x2xbf16>, vector<2x512xbf16>, vector<8x512xf32> -> vector<8x512xf32>
    %c0_3 = arith.constant 0 : index
    %c0_4 = arith.constant 0 : index
    %3 = vector.load %arg3[%c0_3, %c0_4] : memref<8x512xf32, #tpu.memory_space<vmem>>, vector<8x512xf32>
    tpu.vector_store %arg3[%c0_3, %c0_4], %2 {strides = array<i32>} : memref<8x512xf32, #tpu.memory_space<vmem>>, vector<8x512xf32>,
    return
  }
  func.func @transform_0(%arg0: i32) -> (i32, i32) {
    %c0_i32 = arith.constant 0 : i32
    %c0_i32_0 = arith.constant 0 : i32
    %c0_i32_1 = arith.constant 0 : i32
    return %c0_i32, %c0_i32_0 : i32, i32
  }
  func.func @transform_1(%arg0: i32) -> (i32, i32) {
    %c0_i32 = arith.constant 0 : i32
    %c0_i32_0 = arith.constant 0 : i32
    return %c0_i32, %arg0 : i32, i32
  }
  func.func @transform_2(%arg0: i32) -> (i32, i32) {
    %c0_i32 = arith.constant 0 : i32
    %c0_i32_0 = arith.constant 0 : i32
    return %c0_i32, %arg0 : i32, i32
  }
}

</mosaic_0001>

<bundles_post_ra>
// kernel: _lambda_.1
= control target key start
LH: loop header
LB: loop body
LE: loop exit
PB: predicated region body
PF: predicated region fallthrough
CT: control target
= control target key end

     0   :  { %7 = vsyncpa [#allocation3], 0  ;;  %s586_s0 = inlined_call_operand.vmem [shape: bf16[8,2], index: 0, kind: input, shape index: {}]   ;;  %s587_s1 = inlined_call_operand.vmem [shape: bf16[2,1024], index: 1, kind: input, shape index: {}]   ;;  %s588_s2 = inlined_call_operand.hbm [shape: f32[8,1024], index: 2, kind: output, shape index: {}]  }
   0x1   :  { %9 = vsyncpa [#allocation3 + $0x1], 0  ;;  %s484_s9 = smov 0   ;;  %s486_s10 = smov 0  }
   0x2   :  { %s488_s11 = smov 0   ;;  %s490_s12 = smov 0  }
   0x3 LB: > { %s505_s13 = sadd.s32 4294967295, %s464_s12   ;;  %s344_s14 = sadd.s32 4294967294, %s464_s12   ;;  %s464_s12 = sphi %s490_s12, %s594_s12   ;;  %s460_s11 = sphi %s488_s11, %s593_s11   ;;  %s456_s10 = sphi %s486_s10, %s592_s10   ;;  %s452_s9 = sphi %s484_s9, %s591_s9  }
   0x4   : > { %s509_s15 = sadd.s32 1, %s464_s12   ;;  %s69_s16 = sadd.s32 1, %s460_s11 }
   0x5   : > { %s66_s17 = ssub.s32 %s464_s12, %s509_s15  ;;  %p79_p0 = scmp.ne.s32.totalorder %s460_s11, %s456_s10 }
   0x6   : > { %p67_p1 = scmp.eq.s32.totalorder %s66_s17, 0  ;;  %p80_p2 = scmp.eq.s32.totalorder %s505_s13, 1 }
   0x7   : > { %p85_p3 = scmp.ne.s32.totalorder %s456_s10, %s452_s9  ;;  %p86_p4 = scmp.eq.s32.totalorder %s344_s14, 1 }
   0x8   : > { %s520_s18 = scalar_select %p67_p1, %s460_s11, %s69_s16  }
   0x9   : > { %p522_p5 = por %p80_p2, %p79_p0  ;;  %p526_p6 = por %p86_p4, %p85_p3 }
   0xa   : > { %p347_p7 = scmp.ge.s32.totalorder %s464_s12, 1  ;;  %p115_p8 = scmp.lt.s32.totalorder %s464_s12, 3 }
   0xc   : > { %p116_p9 = pnand %p347_p7, %p115_p8 }
   0xd   : > { %s349_s21 = sshll.u32 (!%p116_p9), %s505_s13, 2  ;;  %v157_v0 = vlaneseq (!%p116_p9)  ;;  %v466_v1 = vmov (!%p116_p9), 1966171168   ;;  %v467_v3 = vmov (!%p116_p9), 0   ;;  %vm174_vm0 = vcmask (!%p116_p9), 1040384   ;;  %s133_s27 = sand.u32 (!%p116_p9), 1, %s456_s10  }
   0xe   : > { %119 = sbr.rel (%p116_p9) target bundleno = 262 (0x106), region = 28  ;;  %p137_p10 = scmp.lt.s32.totalorder (!%p116_p9), %s349_s21, 7  ;;  %v155_v2 = vunpack.c.l.s4 (!%p116_p9), %v466_v1  ;;  %219 = vmatprep.mubr.bf16.mxu0 (!%p116_p9), %v467_v3  ;;  %260 = vmatprep.mubr.bf16.mxu1 (!%p116_p9), %v467_v3  ;;  %v143_v15 = vld [vmem:[%s586_s0] sm:$0xf] (!%p116_p9)  ;;  %vm170_vm1 = vcmask (!%p116_p9), 15360  }
   0xf   : > { %v158_v4 = vshrl.u32 (!%p116_p9), %v157_v0, 7  ;;  %s348_s28 = sshll.u32 (!%p116_p9), %s133_s27, 5  ;;  %s360_s29 = sshll.u32 (!%p116_p9), %s505_s13, 9 }
  0x10   : > { %v156_v5 = vunpack.c.0.s8 (!%p116_p9), %v155_v2  ;;  %s135_s30 = scalar_lea.vmem (!%p116_p9), [#allocation2], %s348_s28  ;;  %s544_s6 = scalar_lea.hbm (!%p116_p9), %s588_s2, %s360_s29 }
  0x11   : > { %s288_s3 = sshll.u32 (!%p116_p9), %s135_s30, 4  ;;  %s274_s7 = scalar_lea.sflag (!%p116_p9), [#allocation3], %s133_s27  ;;  %s546_s3 = int_to_ptr.vmem [resolvable:$true] %s288_s3 }
  0x12   : > { %v159_v6 = vsub.s32 (!%p116_p9), %v156_v5, %v158_v4  ;;  %s402_s8 = scalar_lea.vmem (!%p116_p9), %s546_s3, 512  ;;  %s468_s13 = smov (!%p116_p9), [#allocation2]  }
  0x13   : > { %p403_p11 = scmp.ne.s32.totalorder (!%p116_p9), %s546_s3, %s402_s8  ;;  %s406_s14 = sshll.u32 (!%p116_p9), %s468_s13, 4  ;;  %s407_s14 = int_to_ptr.vmem [resolvable:$false] %s406_s14 }
  0x14   : > { %s408_s16 = scalar_lea.vmem (!%p116_p9), %s407_s14, 1024  ;;  %p409_p0 = scmp.lt.s32.totalorder (!%p116_p9), %s546_s3, %s407_s14 }
  0x15   : > { %s596_s21 = smov (!%p137_p10, %s349_s21), 7  ;;  %p404_p12 = pnand %p403_p11, %p522_p5 }
  0x16   : > { %s139_s24 = scalar_lea.vmem %s587_s1, %s596_s21  ;;  %p410_p1 = scmp.lt.s32.totalorder %s408_s16, %s402_s8 }
  0x17   : > { %v350_v7 = vld.sshfl [vmem:[%s139_s24] sm:$0x33 pattern:$0x75316420]  ;;  %p405_p13 = pneg %p404_p12 }
  0x18   : > { %v153_v8 = vcombine.high %v350_v7, %v350_v7  ;;  %v160_v9 = vrot.slane %v350_v7, %v159_v6  ;;  %p411_p2 = por %p410_p1, %p409_p0 }
  0x1a   : > { %v167_v10 = vrot.slane %v153_v8, %v159_v6  ;;  %v176_v11 = vsel %vm174_vm0, %v160_v9, 0  ;;  %v168_v12 = vcombine.high %v160_v9, %v160_v9  ;;  %p412_p3 = pnand %p411_p2, %p405_p13 }
  0x1c   : > { %351 = vmatprep.subr.msk.bf16.mxu0 %vm174_vm0, %v167_v10  ;;  %v169_v13 = vcombine.high %v167_v10, %v167_v10  ;;  %v182_v14 = vsel %vm174_vm0, %v168_v12, 0 }
  0x1d   : > { %188 = vmatpush1.bf16.msra.mxu0 %v176_v11 }
  0x1e   : > { %353 = vmatprep.subr.msk.bf16.mxu1 %vm174_vm0, %v169_v13 }
  0x1f   : > { %229 = vmatpush1.bf16.msra.mxu1 %v182_v14 }
  0x20   : > { %352 = vmatmul.mubr.msk.bf16.vlgmr.msra.gmra.mrb[0].mxu0 %vm170_vm1, %v143_v15 }
  0x22   : > { %354 = vmatmul.mubr.msk.bf16.vlgmr.msra.gmra.mrb[0].mxu1 %vm170_vm1, %v143_v15 }
  0xf3   : > { %v221_v16 = vpop.f32.mrb[0].mxu0 }
  0xf4   : > { %269 = vst [vmem:[%s135_s30] sm:$0xff] %v221_v16  ;;  %v223_v17 = vpop.f32.mrb[1].mxu0 }
  0xf5   : > { %270 = vst [vmem:[%s135_s30 + $0x8] sm:$0xff] %v223_v17  ;;  %v225_v18 = vpop.f32.mrb[2].mxu0  ;;  %v262_v19 = vpop.f32.mrb[0].mxu1 }
  0xf6   : > { %271 = vst [vmem:[%s135_s30 + $0x10] sm:$0xff] %v262_v19  ;;  %v226_v20 = vpop.f32.mrb[3].mxu0  ;;  %v264_v21 = vpop.f32.mrb[1].mxu1 }
  0xf7   : > { %272 = vst [vmem:[%s135_s30 + $0x18] sm:$0xff] %v264_v21  ;;  %v266_v22 = vpop.f32.mrb[2].mxu1 }
  0xf8   : > { %v267_v23 = vpop.f32.mrb[3].mxu1 }
  0xf9   : > { %415 = shalt.err (!%p412_p3)
}
  0xfa   : > { %s416_s17 = scalar_lea.hbm %s544_s6, 512  ;;  %s420_s23 = scalar_lea.hbm %s588_s2, 1024 }
  0xfb   : > { %p417_p4 = scmp.ne.s32.totalorder %s544_s6, %s416_s17  ;;  %p421_p9 = scmp.lt.u32.totalorder %s544_s6, %s588_s2 }
  0xfc   : > { %p422_p10 = scmp.lt.u32.totalorder %s420_s23, %s416_s17  ;;  %p424_p12 = scmp.lt.u32.totalorder %s416_s17, %s544_s6 }
  0xfd   : > { %p418_p7 = pnand %p417_p4, %p522_p5 }
  0xfe   : > { %p423_p11 = por %p422_p10, %p421_p9 }
  0xff   : > { %p419_p8 = pneg %p418_p7 }
 0x100   : > { %p425_p13 = por %p424_p12, %p423_p11 }
 0x102   : > { %p426_p0 = pnand %p425_p13, %p419_p8 }
 0x104   : > { %429 = shalt.err (!%p426_p0)
}
 0x105   : > { %361 = dma.vmem_to_hbm [thread:$0]  (%p522_p5), %s546_s3, 512, %s544_s6, %s274_s7  }
 0x106 PF: > { %p367_p1 = scmp.ge.s32.totalorder %s464_s12, 2  ;;  %s300_s26 = sand.u32 1, %s452_s9  }
 0x107   : > { %s301_s27 = scalar_lea.sflag [#allocation3], %s300_s26 }
 0x108   : > { %p364_p2 = pnand %p367_p1, %p526_p6 }
 0x10a   : > { %447 = dma.done.wait (!%p364_p2), %s301_s27, 512  }
 0x10b   : > { %449 = vsyncadd (!%p364_p2), %s301_s27, 4294966784  ;;  %p12_p3 = scmp.ge.s32.totalorder %s509_s15, 4   ;;  %s591_s9 = smov %s456_s10 }
 0x10c   : > { %s592_s10 = smov %s460_s11  ;;  %s593_s11 = smov %s520_s18 }
 0x10d   : > { %s594_s12 = smov %s509_s15  ;;  %14 = sbr.rel (!%p12_p3) target bundleno = 3 (0x3), region = 63 }
 0x114   :  { %306 = vsyncpa [#allocation3], 1 }
 0x115   :  { %308 = vsyncpa [#allocation3 + $0x1], 1 }

</bundles_post_ra>
